<compile_context>
chip_gen: v7x
topology: tpu7x:2x2x1
jax: 0.10.0
libtpu: 0.0.40
codegen_flags: <defaults>
</compile_context>

<pallas_src>
import jax
import jax.numpy as jnp
from jax.experimental import pallas as pl
from jax.experimental.pallas import tpu as pltpu

TARGET_DIM = 60   # self.target_dim
LOGIT_OUT = 31    # nn.Linear(60, 31)
OUT_PAD = 128     # lane-padded logit width (sliced back to 31 in the wrapper)


def _semantic_embedding_kernel(avg_ref, pred_ref, w_ref, b_ref, out_ref):
    """One grid step == one batch tile of TB rows.

    avg_ref : (TB, E)       VMEM
    pred_ref: (TB, S, E)    VMEM   (un-padded sequence)
    w_ref   : (S, OUT_PAD)  VMEM   (first S rows of logit weight, lanes padded)
    b_ref   : (1, OUT_PAD)  VMEM   (logit bias, lanes padded with zeros)
    out_ref : (TB, OUT_PAD) VMEM
    """
    avg = avg_ref[...]                      # (TB, E)  f32
    pred = pred_ref[...]                    # (TB, S, E) f32

    # Stage 1: vt[b, t] = sum_e avg[b, e] * pred[b, t, e]
    # VPU broadcast-multiply + lane reduce; avoids B tiny M=1 MXU matmuls.
    vt = jnp.sum(avg[:, None, :] * pred, axis=-1)            # (TB, S) f32

    # Stage 2: one MXU matmul per batch tile.
    logits = jnp.dot(vt, w_ref[...], preferred_element_type=jnp.float32)
    logits = logits + b_ref[...]                              # (TB, OUT_PAD)

    # Sigmoid (EUP exp + VALU); padded lanes get sigmoid(0)=0.5, sliced off
    # in the wrapper.
    out_ref[...] = (1.0 / (1.0 + jnp.exp(-logits))).astype(out_ref.dtype)


def _choose_batch_tile(B, S, E, budget_bytes=20 << 20):
    """Largest sublane-aligned batch tile whose double-buffered blocks fit
    a conservative VMEM budget (safe on v5e/v6e/v7x scoped defaults)."""
    if B <= 8:
        return B                                    # full-dim block is legal
    per_row_bytes = 4 * (S * E + E + OUT_PAD)       # pred + avg + out, f32
    tb = budget_bytes // (2 * per_row_bytes)        # 2x for double buffering
    tb = int(min(tb, B, 512))
    tb = max((tb // 8) * 8, 8)                      # multiple of 8 sublanes
    return tb


def semantic_embedding_forward(avg, pred_output, w_logit, b_logit):
    """avg: (B, E) f32, pred_output: (B, S, E) f32 with S <= 60.

    w_logit: (60, 31) (transposed vs. PyTorch's (31, 60)), b_logit: (31,).
    Returns (B, 31) f32.
    """
    B, E = avg.shape
    _, S, _ = pred_output.shape
    assert S <= TARGET_DIM

    # No host-side pad of pred_output: zero-padded sequence rows contribute 0
    # to visual_text, so using only the first S rows of the weight is exact.
    w_eff = w_logit[:S, :]                                          # (S, 31)
    w_pad = jnp.zeros((S, OUT_PAD), w_logit.dtype).at[:, :LOGIT_OUT].set(w_eff)
    b_pad = jnp.zeros((1, OUT_PAD), b_logit.dtype).at[:, :LOGIT_OUT].set(
        b_logit.astype(b_logit.dtype))

    tb = _choose_batch_tile(B, S, E)
    grid = (pl.cdiv(B, tb),)

    # Explicit VMEM budget: double-buffered blocks + weights + slack, capped
    # so the same kernel fits v7x's 64 MiB VMEM as well as v5e/v6e.
    need = 2 * tb * 4 * (S * E + E + OUT_PAD) + 4 * (S + 1) * OUT_PAD
    vmem_limit = int(min(48 << 20, max(2 * need, 8 << 20)))

    grid_spec = pltpu.PrefetchScalarGridSpec(
        num_scalar_prefetch=0,
        grid=grid,
        in_specs=[
            pl.BlockSpec((tb, E), lambda i: (i, 0)),
            pl.BlockSpec((tb, S, E), lambda i: (i, 0, 0)),
            pl.BlockSpec((S, OUT_PAD), lambda i: (0, 0)),
            pl.BlockSpec((1, OUT_PAD), lambda i: (0, 0)),
        ],
        out_specs=pl.BlockSpec((tb, OUT_PAD), lambda i: (i, 0)),
    )

    out_padded = pl.pallas_call(
        _semantic_embedding_kernel,
        out_shape=jax.ShapeDtypeStruct((B, OUT_PAD), jnp.float32),
        grid_spec=grid_spec,
        compiler_params=pltpu.CompilerParams(
            dimension_semantics=("parallel",),
            vmem_limit_bytes=vmem_limit,
        ),
    )(avg, pred_output, w_pad, b_pad)

    return out_padded[:, :LOGIT_OUT]


def _reference(avg, pred_output, w_logit, b_logit):
    """Pure-JAX reference mirroring the PyTorch forward."""
    _, S, _ = pred_output.shape
    pred_padded = jnp.pad(pred_output, ((0, 0), (0, TARGET_DIM - S), (0, 0)))
    # (B,1,E) @ (B,E,60) -> (B,1,60) -> (B,60)
    vt = jnp.einsum("be,bte->bt", avg, pred_padded)
    return jax.nn.sigmoid(vt @ w_logit + b_logit)


if __name__ == "__main__":
    # Small, forward-consistent shapes: batch=2, seq=8 (<=60), embed=32.
    B, S, E = 2, 8, 32

    key = jax.random.PRNGKey(0)
    k_avg, k_pred, k_w, k_b = jax.random.split(key, 4)

    avg = jax.random.normal(k_avg, (B, E), dtype=jnp.float32)
    pred_output = jax.random.normal(k_pred, (B, S, E), dtype=jnp.float32)

    # Deterministic synthetic parameters for self.logit = nn.Linear(60, 31),
    # stored transposed as (60, 31).
    w_logit = jax.random.uniform(
        k_w, (TARGET_DIM, LOGIT_OUT), minval=-0.1, maxval=0.1, dtype=jnp.float32
    )
    b_logit = jax.random.uniform(
        k_b, (LOGIT_OUT,), minval=-0.1, maxval=0.1, dtype=jnp.float32
    )

    out = semantic_embedding_forward(avg, pred_output, w_logit, b_logit)
    out = jax.block_until_ready(out)

    ref = _reference(avg, pred_output, w_logit, b_logit)
    assert out.shape == (B, LOGIT_OUT)
    assert jnp.allclose(out, ref, atol=1e-5, rtol=1e-5)

    print("KERNEL_OK")
</pallas_src>

<mosaic_0001>
module attributes {stable_mosaic.version = 11 : i64} {
  func.func @_semantic_embedding_kernel(%arg0: i32, %arg1: memref<2x32xf32, #tpu.memory_space<vmem>>, %arg2: memref<2x8x32xf32, #tpu.memory_space<vmem>>, %arg3: memref<8x128xf32, #tpu.memory_space<vmem>>, %arg4: memref<1x128xf32, #tpu.memory_space<vmem>>, %arg5: memref<2x128xf32, #tpu.memory_space<vmem>>) attributes {dimension_semantics = [#tpu.dimension_semantics<parallel>], iteration_bounds = array<i64: 1>, scalar_prefetch = 0 : i64, scratch_operands = 0 : i64, tpu.core_type = #tpu.core_type<tc>, window_params = [{transform_indices = @transform_0, window_bounds = array<i64: 2, 32>}, {transform_indices = @transform_1, window_bounds = array<i64: 2, 8, 32>}, {pipeline_mode = #tpu.pipeline_mode<synchronous>, transform_indices = @transform_2, window_bounds = array<i64: 8, 128>}, {pipeline_mode = #tpu.pipeline_mode<synchronous>, transform_indices = @transform_3, window_bounds = array<i64: 1, 128>}, {transform_indices = @transform_4, window_bounds = array<i64: 2, 128>}]} {
    %c0 = arith.constant 0 : index
    %c0_0 = arith.constant 0 : index
    %0 = vector.load %arg1[%c0, %c0_0] : memref<2x32xf32, #tpu.memory_space<vmem>>, vector<2x32xf32>
    %c0_1 = arith.constant 0 : index
    %c0_2 = arith.constant 0 : index
    %c0_3 = arith.constant 0 : index
    %1 = vector.load %arg2[%c0_1, %c0_2, %c0_3] : memref<2x8x32xf32, #tpu.memory_space<vmem>>, vector<2x8x32xf32>
    %2 = vector.shape_cast %0 : vector<2x32xf32> to vector<2x1x32xf32>
    %3 = vector.broadcast %2 : vector<2x1x32xf32> to vector<2x8x32xf32>
    %4 = arith.mulf %3, %1 : vector<2x8x32xf32>
    %cst = arith.constant dense<0.000000e+00> : vector<2x8xf32>
    %5 = vector.multi_reduction <add>, %4, %cst [2] : vector<2x8x32xf32> to vector<2x8xf32>
    %c0_4 = arith.constant 0 : index
    %c0_5 = arith.constant 0 : index
    %6 = vector.load %arg3[%c0_4, %c0_5] : memref<8x128xf32, #tpu.memory_space<vmem>>, vector<8x128xf32>
    %cst_6 = arith.constant dense<0.000000e+00> : vector<2x128xf32>
    %7 = tpu.matmul %5, %6, %cst_6 {dimension_numbers = #tpu.dot_dimension_numbers<[1], [0], [0], [1], [0, 0, 1, 1], [], []>} : vector<2x8xf32>, vector<8x128xf32>, vector<2x128xf32> -> vector<2x128xf32>
    %c0_7 = arith.constant 0 : index
    %c0_8 = arith.constant 0 : index
    %8 = vector.load %arg4[%c0_7, %c0_8] : memref<1x128xf32, #tpu.memory_space<vmem>>, vector<1x128xf32>
    %9 = vector.broadcast %8 : vector<1x128xf32> to vector<2x128xf32>
    %10 = arith.addf %7, %9 : vector<2x128xf32>
    %cst_9 = arith.constant 0.000000e+00 : f32
    %11 = vector.broadcast %cst_9 : f32 to vector<2x128xf32>
    %12 = arith.subf %11, %10 : vector<2x128xf32>
    %13 = math.exp %12 : vector<2x128xf32>
    %cst_10 = arith.constant 1.000000e+00 : f32
    %14 = vector.broadcast %cst_10 : f32 to vector<2x128xf32>
    %15 = arith.addf %14, %13 : vector<2x128xf32>
    %cst_11 = arith.constant 1.000000e+00 : f32
    %16 = vector.broadcast %cst_11 : f32 to vector<2x128xf32>
    %17 = arith.divf %16, %15 : vector<2x128xf32>
    %c0_12 = arith.constant 0 : index
    %c0_13 = arith.constant 0 : index
    %18 = vector.load %arg5[%c0_12, %c0_13] : memref<2x128xf32, #tpu.memory_space<vmem>>, vector<2x128xf32>
    tpu.vector_store %arg5[%c0_12, %c0_13], %17 {strides = array<i32>} : memref<2x128xf32, #tpu.memory_space<vmem>>, vector<2x128xf32>,
    return
  }
  func.func @transform_0(%arg0: i32) -> (i32, i32) {
    %c0_i32 = arith.constant 0 : i32
    %c0_i32_0 = arith.constant 0 : i32
    return %arg0, %c0_i32 : i32, i32
  }
  func.func @transform_1(%arg0: i32) -> (i32, i32, i32) {
    %c0_i32 = arith.constant 0 : i32
    %c0_i32_0 = arith.constant 0 : i32
    %c0_i32_1 = arith.constant 0 : i32
    return %arg0, %c0_i32, %c0_i32_0 : i32, i32, i32
  }
  func.func @transform_2(%arg0: i32) -> (i32, i32) {
    %c0_i32 = arith.constant 0 : i32
    %c0_i32_0 = arith.constant 0 : i32
    %c0_i32_1 = arith.constant 0 : i32
    return %c0_i32, %c0_i32_0 : i32, i32
  }
  func.func @transform_3(%arg0: i32) -> (i32, i32) {
    %c0_i32 = arith.constant 0 : i32
    %c0_i32_0 = arith.constant 0 : i32
    %c0_i32_1 = arith.constant 0 : i32
    return %c0_i32, %c0_i32_0 : i32, i32
  }
  func.func @transform_4(%arg0: i32) -> (i32, i32) {
    %c0_i32 = arith.constant 0 : i32
    %c0_i32_0 = arith.constant 0 : i32
    return %arg0, %c0_i32 : i32, i32
  }
}

</mosaic_0001>

<bundles_post_ra>
// kernel: tpu_custom_call.1
= control target key start
LH: loop header
LB: loop body
LE: loop exit
PB: predicated region body
PF: predicated region fallthrough
CT: control target
= control target key end

     0   :  { %9 = vsyncpa [#allocation3], 0  ;;  %s420_s0 = inlined_call_operand.hbm [shape: f32[2,32], index: 0, kind: input, shape index: {}]   ;;  %s421_s1 = inlined_call_operand.hbm [shape: f32[2,8,32], index: 1, kind: input, shape index: {}]   ;;  %s422_s2 = inlined_call_operand.hbm [shape: f32[8,128], index: 2, kind: input, shape index: {}]   ;;  %s423_s3 = inlined_call_operand.vmem [shape: f32[1,128], index: 3, kind: input, shape index: {}]   ;;  %s424_s4 = inlined_call_operand.hbm [shape: f32[2,128], index: 4, kind: output, shape index: {}]  }
   0x1   :  { %10 = vsyncpa [#allocation6], 0 }
   0x2   :  { %11 = vsyncpa [#allocation4], 0  ;;  %s335_s15 = smov [#allocation5]   ;;  %s241_s19 = scalar_lea.hbm %s421_s1, 256 }
   0x3   :  { %s27_s16 = sshll.u32 %s335_s15, 4  ;;  %p242_p0 = scmp.ne.s32.totalorder %s421_s1, %s241_s19  ;;  %s28_s16 = int_to_ptr.vmem [resolvable:$true] %s27_s16 }
   0x4   :  { %p245_p1 = scmp.lt.u32.totalorder %s241_s19, %s421_s1 }
   0x6   :  { %p247_p2 = pnand %p245_p1, %p242_p0 }
   0x8   :  { %250 = shalt.err (!%p247_p2)
}
   0x9   :  { %s251_s24 = scalar_lea.vmem %s28_s16, 256  ;;  %p256_p4 = scmp.lt.s32.totalorder %s28_s16, %s28_s16 }
   0xa   :  { %p252_p3 = scmp.ne.s32.totalorder %s28_s16, %s251_s24  ;;  %p257_p5 = scmp.lt.s32.totalorder %s251_s24, %s251_s24 }
   0xc   :  { %p258_p6 = por %p257_p5, %p256_p4 }
   0xe   :  { %p259_p7 = pnand %p258_p6, %p252_p3 }
  0x10   :  { %262 = shalt.err (!%p259_p7)
}
  0x11   :  { %s336_s25 = smov 128   ;;  %s337_s26 = smov 8  }
  0x12   :  { %33 = dma.hbm_to_vmem [thread:$0]  %s421_s1, 256, %s28_s16, [#allocation6], %s336_s25, %s336_s25, %s337_s26  }
  0x13   :  { %s338_s29 = smov [#allocation2]   ;;  %s339_s5 = smov [#allocation7]  }
  0x14   :  { %s18_s30 = sshll.u32 %s338_s29, 4  ;;  %s40_s6 = sshll.u32 %s339_s5, 4  ;;  %s19_s30 = int_to_ptr.vmem [resolvable:$true] %s18_s30  ;;  %s41_s6 = int_to_ptr.vmem [resolvable:$true] %s40_s6 }
  0x15   :  { %s263_s9 = scalar_lea.hbm %s420_s0, 32 }
  0x16   :  { %p264_p8 = scmp.ne.s32.totalorder %s420_s0, %s263_s9  ;;  %p267_p9 = scmp.lt.u32.totalorder %s263_s9, %s420_s0 }
  0x18   :  { %p269_p10 = pnand %p267_p9, %p264_p8 }
  0x1a   :  { %272 = shalt.err (!%p269_p10)
}
  0x1b   :  { %s273_s1 = scalar_lea.vmem %s19_s30, 32  ;;  %p278_p12 = scmp.lt.s32.totalorder %s19_s30, %s19_s30 }
  0x1c   :  { %p274_p11 = scmp.ne.s32.totalorder %s19_s30, %s273_s1  ;;  %p279_p13 = scmp.lt.s32.totalorder %s273_s1, %s273_s1 }
  0x1e   :  { %p280_p0 = por %p279_p13, %p278_p12 }
  0x20   :  { %p281_p1 = pnand %p280_p0, %p274_p11 }
  0x22   :  { %284 = shalt.err (!%p281_p1)
}
  0x23   :  { %21 = dma.hbm_to_vmem [thread:$0]  %s420_s0, 32, %s19_s30, [#allocation3]  }
  0x24   :  { %s285_s18 = scalar_lea.hbm %s422_s2, 128 }
  0x25   :  { %p286_p2 = scmp.ne.s32.totalorder %s422_s2, %s285_s18  ;;  %p289_p3 = scmp.lt.u32.totalorder %s285_s18, %s422_s2 }
  0x27   :  { %p291_p4 = pnand %p289_p3, %p286_p2 }
  0x29   :  { %294 = shalt.err (!%p291_p4)
}
  0x2a   :  { %s295_s23 = scalar_lea.vmem %s41_s6, 128  ;;  %p300_p6 = scmp.lt.s32.totalorder %s41_s6, %s41_s6 }
  0x2b   :  { %p296_p5 = scmp.ne.s32.totalorder %s41_s6, %s295_s23  ;;  %p301_p7 = scmp.lt.s32.totalorder %s295_s23, %s295_s23 }
  0x2d   :  { %p302_p8 = por %p301_p7, %p300_p6 }
  0x2f   :  { %p303_p9 = pnand %p302_p8, %p296_p5 }
  0x31   :  { %306 = shalt.err (!%p303_p9)
}
  0x32   :  { %43 = dma.hbm_to_vmem [thread:$0]  %s422_s2, 128, %s41_s6, [#allocation6]  }
  0x33   :  { %329 = dma.done.wait [#allocation3], 32  }
  0x34   :  { %330 = vsyncadd [#allocation3], 4294967264 }
  0x35   :  { %331 = dma.done.wait [#allocation6], 384  }
  0x36   :  { %332 = vsyncadd [#allocation6], 4294966912  ;;  %v70_v0 = vlaneseq  ;;  %v340_v1 = vmov 1966171168   ;;  %v56_v12 = vld [vmem:[#allocation5] sm:$0xff]  ;;  %vm93_vm0 = vcmask 261120  }
  0x37   :  { %v68_v2 = vunpack.c.l.s4 %v340_v1  ;;  %v218_v9 = vld.sshfl [vmem:[#allocation2] sm:$0x11 pattern:$0x75316420]  ;;  %v57_v15 = vld [vmem:[#allocation5 + $0x8] sm:$0xff]  ;;  %v100_v21 = vld [vmem:[#allocation7] sm:$0xff] }
  0x38   :  { %v71_v3 = vshrl.u32 %v70_v0, 7  ;;  %v111_v4 = vand.u32 127, %v70_v0  ;;  %v66_v11 = vcombine.high %v218_v9, %v218_v9  ;;  %v341_v22 = vmov 0.0   ;;  %v219_v28 = vld [vmem:[%s423_s3] ss:$0 sm:$0xff]  ;;  %s343_s26 = smov [#allocation8]  }
  0x39   :  { %v69_v5 = vunpack.c.0.s8 %v68_v2  ;;  %223 = vmatprep.subr.mxu0 %v341_v22  ;;  %vm342_vm1 = vmmov 0   ;;  %vm120_vm2 = vcmask 1041409   ;;  %vm122_vm3 = vcmask 64512   ;;  %s208_s27 = sshll.u32 %s343_s26, 4  ;;  %s209_s27 = int_to_ptr.vmem [resolvable:$true] %s208_s27 }
  0x3a   :  { %v114_v6 = vsub.s32 %v111_v4, %v71_v3  ;;  %v83_v8 = vsub.s32 0, %v71_v3  ;;  %225 = vmatprep.mubr.msk.f32.mxu0 %vm342_vm1, %v341_v22  ;;  %224 = vmatpush3.msra.mxu0 %v100_v21  ;;  %s307_s28 = scalar_lea.vmem %s209_s27, 32  ;;  %p312_p11 = scmp.lt.s32.totalorder %s209_s27, %s209_s27 }
  0x3b   :  { %v72_v7 = vsub.s32 %v69_v5, %v71_v3  ;;  %p308_p10 = scmp.ne.s32.totalorder %s209_s27, %s307_s28  ;;  %p313_p12 = scmp.lt.s32.totalorder %s307_s28, %s307_s28 }
  0x3d   :  { %v73_v10 = vrot.slane %v218_v9, %v72_v7  ;;  %v80_v14 = vrot.slane %v66_v11, %v72_v7  ;;  %p314_p13 = por %p313_p12, %p312_p11 }
  0x3f   :  { %v84_v13 = vrot.slane %v73_v10, %v83_v8  ;;  %v88_v17 = vrot.slane %v80_v14, %v83_v8  ;;  %p315_p0 = pnand %p314_p13, %p308_p10 }
  0x41   :  { %v91_v16 = vmul.f32 %v84_v13, %v56_v12  ;;  %v92_v19 = vmul.f32 %v88_v17, %v57_v15 }
  0x43   :  { %v94_v18 = vsel %vm93_vm0, %v91_v16, 0.0  ;;  %v97_v20 = vsel %vm93_vm0, %v92_v19, 0.0 }
  0x44   :  { %95 = vadd.xlane.f32.xlu0 %v94_v18 }
  0x48   :  { %98 = vadd.xlane.f32.xlu0 %v97_v20 }
  0xd1   :  { %v96_v23 = vpop.xlane.xlu0 %95 }
  0xd2   :  { %v115_v25 = vrot.slane %v96_v23, %v114_v6 }
  0xd5   :  { %v99_v24 = vpop.xlane.xlu0 %98 }
  0xd6   :  { %v119_v26 = vrot.slane %v99_v24, %v114_v6 }
  0xd8   :  { %v121_v27 = vsel %vm120_vm2, %v119_v26, %v115_v25 }
  0xd9   :  { %226 = vmatmul.mubr.msk.f32.vlgmr.msra.gmra.mrb[0].mxu0 %vm122_vm3, %v121_v27 }
 0x1ac   :  { %v191_v29 = vpop.f32.mrb[0].mxu0 }
 0x1ad   :  { %v192_v30 = vadd.f32 %v219_v28, %v191_v29  ;;  %v227_v31 = vpop.f32.mrb[1].mxu0 }
 0x1af   :  { %v195_v32 = vsub.f32 0.0, %v192_v30 }
 0x1b1   :  { %v196_v33 = vmul.f32 1.442695, %v195_v32 }
 0x1b3   :  { %237 = vpow2.f32 %v196_v33 }
 0x1bd   :  { %v238_v34 = vpop.eup %237 }
 0x1be   :  { %v198_v35 = vadd.f32 1.0, %v238_v34 }
 0x1c0   :  { %239 = vrcp.f32 %v198_v35 }
 0x1ca   :  { %v240_v36 = vpop.eup %239 }
 0x1cb   :  { %201 = vst [vmem:[#allocation8] sm:$0x3] %v240_v36 }
 0x1cc   :  { %318 = shalt.err (!%p315_p0)
}
 0x1cd   :  { %s319_s30 = scalar_lea.hbm %s424_s4, 32 }
 0x1ce   :  { %p320_p1 = scmp.ne.s32.totalorder %s424_s4, %s319_s30  ;;  %p323_p2 = scmp.lt.u32.totalorder %s319_s30, %s424_s4 }
 0x1d0   :  { %p325_p3 = pnand %p323_p2, %p320_p1 }
 0x1d2   :  { %328 = shalt.err (!%p325_p3)
}
 0x1d3   :  { %211 = dma.vmem_to_hbm [thread:$0]  %s209_s27, 32, %s424_s4, [#allocation4]  }
 0x1d4   :  { %333 = dma.done.wait [#allocation4], 32  }
 0x1d5   :  { %334 = vsyncadd [#allocation4], 4294967264 }
 0x1d6   :  { %215 = vsyncpa [#allocation3], 1 }
 0x1d7   :  { %216 = vsyncpa [#allocation6], 1 }
 0x1d8   :  { %217 = vsyncpa [#allocation4], 1 }

</bundles_post_ra>
